<compile_context>
chip_gen: v5e
topology: v5e:2x2
jax: 0.10.0
libtpu: 0.0.40
codegen_flags: <defaults>
</compile_context>

<pallas_src>
import functools
import math

import jax
import jax.numpy as jnp
import numpy as np
from jax.experimental import pallas as pl
from jax.experimental.pallas import tpu as pltpu

LANE = 128


def _round_up(x, m):
    return ((x + m - 1) // m) * m


def _cdiv(a, b):
    return -(-a // b)


# ----------------------------------------------------------------------------
# Probe: does this jax support BlockSpec(pipeline_mode=pl.Buffered(1))?
# (single-buffer the grid-invariant weight slabs; fall back silently if not)
# ----------------------------------------------------------------------------
@functools.lru_cache(maxsize=None)
def _single_buffer_supported():
    try:
        spec = pl.BlockSpec((8, LANE), lambda i: (0, 0),
                            pipeline_mode=pl.Buffered(1))

        def probe(w_ref, o_ref):
            o_ref[...] = w_ref[...]

        fn = pl.pallas_call(
            probe,
            out_shape=jax.ShapeDtypeStruct((8, LANE), jnp.float32),
            grid=(1,),
            in_specs=[spec],
            out_specs=pl.BlockSpec((8, LANE), lambda i: (0, 0)),
        )
        jax.jit(fn).lower(jax.ShapeDtypeStruct((8, LANE), jnp.float32)).compile()
        return True
    except Exception:
        return False


def _const_spec(shape, single_buffer=False):
    n = len(shape)

    def index_map(g):
        return (0,) * n

    if single_buffer and _single_buffer_supported():
        return pl.BlockSpec(shape, index_map, pipeline_mode=pl.Buffered(1))
    return pl.BlockSpec(shape, index_map)


# ----------------------------------------------------------------------------
# Fused kernel: conv1(+chomp)+relu -> conv2(+chomp)+relu -> +res -> relu
# Activations arrive flattened as (NB*L, C); causal shift is done on the f32
# matmul output via pltpu.roll + mask (XLU), never by copying activations.
# ----------------------------------------------------------------------------
def _make_tcn_kernel(K, dilation, L, NB, Cinp, Coutp, use_downsample):
    nz_list = [dilation * (K - 1 - k) for k in range(K)]   # per-tap causal delay
    M = NB * L

    def kernel(x_ref, w1_ref, b1_ref, w2_ref, b2_ref, *rest):
        if use_downsample:
            bds_ref, o_ref = rest
        else:
            (o_ref,) = rest

        # time index (position within its own sequence) of every flattened row
        row_t = jax.lax.broadcasted_iota(
            jnp.int32, (NB, L, Coutp), 1).reshape(M, Coutp)

        def causal_tap_sum(z):
            # z: (M, >=K*Coutp) f32 -- matmul of UNSHIFTED activations against
            # the K tap weights laid out side-by-side along the columns.
            # out[t] = sum_k z_k[t - nz_k], zero for t < nz_k.
            acc = z[:, (K - 1) * Coutp:K * Coutp]            # nz = 0 tap
            for k in range(K - 1):
                nz = nz_list[k]
                if nz >= L:                                  # tap never in range
                    continue
                blk = pltpu.roll(z[:, k * Coutp:(k + 1) * Coutp],
                                 shift=nz, axis=0)
                acc = acc + jnp.where(row_t >= nz, blk, 0.0)
            return acc

        x = x_ref[...]                                       # (M, Cinp) bf16

        # conv1 taps (+ fused 1x1 downsample columns): single wide MXU matmul
        z1 = jnp.dot(x, w1_ref[...], preferred_element_type=jnp.float32)
        y1 = jnp.maximum(causal_tap_sum(z1) + b1_ref[...], 0.0)
        # dropout1: identity (eval mode)

        # conv2 taps
        z2 = jnp.dot(y1.astype(jnp.bfloat16), w2_ref[...],
                     preferred_element_type=jnp.float32)
        y2 = jnp.maximum(causal_tap_sum(z2) + b2_ref[...], 0.0)
        # dropout2: identity (eval mode)

        # residual: fused 1x1 downsample (last column block of z1) or identity
        if use_downsample:
            res = z1[:, K * Coutp:(K + 1) * Coutp] + bds_ref[...]
        else:
            res = x.astype(jnp.float32)

        o_ref[...] = jnp.maximum(y2 + res, 0.0).astype(o_ref.dtype)

    return kernel


# ----------------------------------------------------------------------------
# Block planning: NB sequences per grid step, sized from a VMEM budget (safe on
# v7x's 64 MiB), targeting M = NB*L >= ~1024, with >=2 grid steps when possible.
# ----------------------------------------------------------------------------
def _plan_blocks(N, L, Cinp, Coutp, K, use_downsample, batch_block):
    kcols = K + (1 if use_downsample else 0)
    # per-sequence VMEM bytes per grid step: double-buffered bf16 in/out blocks
    # + the f32 in-kernel temporaries (z1, z2, acc/y/res/row_t).
    per_seq = L * (2 * 2 * Cinp
                   + 2 * 2 * Coutp
                   + 4 * (kcols + K + 4) * Coutp)
    budget = 40 * 1024 * 1024                 # headroom below v7x's 64 MiB VMEM
    if batch_block is not None:
        NB = batch_block
    else:
        NB = max(1, min(N,
                        _cdiv(1024, L),        # target M = NB*L >= ~1024
                        budget // per_seq))
        if N >= 2:
            NB = min(NB, _cdiv(N, 2))          # >=2 grid steps (v7x has 2 TCs)
    # flattened (NB*L, C) blocks need NB*L to be a sublane (8) multiple
    mult = 8 // math.gcd(L, 8)
    NB = _cdiv(NB, mult) * mult
    weight_bytes = 2 * (Cinp * kcols * Coutp + Coutp * K * Coutp)   # bf16 slabs
    step_bytes = NB * per_seq + weight_bytes
    vmem_limit = int(min(max(2 * step_bytes, 32 * 1024 * 1024),
                         64 * 1024 * 1024))
    return NB, vmem_limit


# ----------------------------------------------------------------------------
# Channels-last fast path: (N, L, Cin) -> (N, L, Cout) bfloat16.
# Stacked TCN blocks should chain this directly (keeping activations NLC bf16)
# to avoid per-block NCL<->NLC transposes and f32 round-trips.
# ----------------------------------------------------------------------------
def tcn_block_apply_nlc(x_nlc, params, *, kernel_size, dilation,
                        batch_block=None):
    N, L, Cin = x_nlc.shape
    K = kernel_size
    assert K >= 2, "canonical TCN block needs kernel_size >= 2"
    Cout = params["b1"].shape[0]
    use_downsample = "wds" in params
    if not use_downsample:
        assert Cin == Cout, "identity residual requires Cin == Cout"

    Cinp = _round_up(Cin, LANE)
    Coutp = _round_up(Cout, LANE)
    NB, vmem_limit = _plan_blocks(N, L, Cinp, Coutp, K, use_downsample,
                                  batch_block)
    Ng = _cdiv(N, NB)
    Npad = Ng * NB
    M = NB * L

    # ---- activations: bf16, zero-pad batch & channels, flatten to rows ------
    xq = x_nlc.astype(jnp.bfloat16)
    xq = jnp.pad(xq, ((0, Npad - N), (0, 0), (0, Cinp - Cin)))
    x2d = xq.reshape(Npad * L, Cinp)

    # ---- weights: tap-k column blocks side by side (+downsample on conv1) ---
    def pack_taps(w, cin, cinp):
        cout = w.shape[0]
        w_kio = jnp.transpose(w, (2, 1, 0))                   # (K, Cin, Cout)
        w_kio = jnp.pad(w_kio, ((0, 0), (0, cinp - cin), (0, Coutp - cout)))
        return jnp.transpose(w_kio, (1, 0, 2)).reshape(cinp, K * Coutp) \
                  .astype(jnp.bfloat16)

    def pack_bias(b):
        return jnp.pad(b, (0, Coutp - b.shape[0])).reshape(1, Coutp) \
                  .astype(jnp.float32)

    w1 = pack_taps(params["w1"], Cin, Cinp)                   # (Cinp, K*Coutp)
    w2 = pack_taps(params["w2"], Cout, Coutp)                 # (Coutp, K*Coutp)
    b1 = pack_bias(params["b1"])
    b2 = pack_bias(params["b2"])

    if use_downsample:
        wds = jnp.transpose(params["wds"][:, :, 0], (1, 0))   # (Cin, Cout)
        wds = jnp.pad(wds, ((0, Cinp - Cin), (0, Coutp - Cout))) \
                 .astype(jnp.bfloat16)
        w1 = jnp.concatenate([w1, wds], axis=1)               # (Cinp,(K+1)*Coutp)

    w1cols = w1.shape[1]
    in_specs = [
        pl.BlockSpec((M, Cinp), lambda g: (g, 0)),            # activations
        _const_spec((Cinp, w1cols), single_buffer=True),      # conv1(+ds) taps
        _const_spec((1, Coutp)),                              # b1
        _const_spec((Coutp, K * Coutp), single_buffer=True),  # conv2 taps
        _const_spec((1, Coutp)),                              # b2
    ]
    args = [x2d, w1, b1, w2, b2]
    if use_downsample:
        in_specs.append(_const_spec((1, Coutp)))              # bds
        args.append(pack_bias(params["bds"]))

    kernel = _make_tcn_kernel(K, dilation, L, NB, Cinp, Coutp, use_downsample)

    out2d = pl.pallas_call(
        kernel,
        out_shape=jax.ShapeDtypeStruct((Npad * L, Coutp), jnp.bfloat16),
        grid=(Ng,),
        in_specs=in_specs,
        out_specs=pl.BlockSpec((M, Coutp), lambda g: (g, 0)),
        compiler_params=pltpu.CompilerParams(
            dimension_semantics=("parallel",),
            vmem_limit_bytes=vmem_limit),
    )(*args)

    out = out2d.reshape(Npad, L, Coutp)
    return out[:N, :, :Cout]


# ----------------------------------------------------------------------------
# PyTorch-compatible interface: x (N, Cin, L) f32 -> (N, Cout, L) f32.
# ----------------------------------------------------------------------------
def tcn_block_forward(x, params, *, kernel_size, stride, dilation, padding,
                      batch_block=None):
    assert stride == 1, "kernel implements the canonical TCN stride=1 case"
    assert padding == dilation * (kernel_size - 1) and padding > 0, \
        "canonical causal TCN config required (padding = dilation*(K-1))"
    x_nlc = jnp.transpose(x, (0, 2, 1))
    out_nlc = tcn_block_apply_nlc(x_nlc, params, kernel_size=kernel_size,
                                  dilation=dilation, batch_block=batch_block)
    # NOTE: for stacked blocks, call tcn_block_apply_nlc directly and keep
    # activations channels-last bf16 to avoid these per-block transposes.
    return jnp.transpose(out_nlc, (0, 2, 1)).astype(jnp.float32)


# ----------------------------------------------------------------------------
# Deterministic parameter init (synthetic), reproducing weight_norm semantics:
#     weight = g * v / ||v||_2   (norm over (Cin, K) per output channel)
# Downsample params only exist when n_inputs != n_outputs (matches PyTorch).
# ----------------------------------------------------------------------------
def init_params(key, n_inputs, n_outputs, kernel_size):
    ks = jax.random.split(key, 8)

    def weight_norm(v, g):
        nrm = jnp.sqrt(jnp.sum(v * v, axis=(1, 2), keepdims=True))
        return g * v / nrm

    v1 = 0.05 * jax.random.normal(ks[0], (n_outputs, n_inputs, kernel_size), jnp.float32)
    g1 = jax.random.uniform(ks[1], (n_outputs, 1, 1), jnp.float32, 0.5, 1.5)
    v2 = 0.05 * jax.random.normal(ks[2], (n_outputs, n_outputs, kernel_size), jnp.float32)
    g2 = jax.random.uniform(ks[3], (n_outputs, 1, 1), jnp.float32, 0.5, 1.5)

    p = {
        "w1": weight_norm(v1, g1),                                # (Cout, Cin, K)
        "b1": 0.1 * jax.random.normal(ks[4], (n_outputs,), jnp.float32),
        "w2": weight_norm(v2, g2),                                # (Cout, Cout, K)
        "b2": 0.1 * jax.random.normal(ks[5], (n_outputs,), jnp.float32),
    }
    if n_inputs != n_outputs:
        p["wds"] = 0.01 * jax.random.normal(ks[6], (n_outputs, n_inputs, 1), jnp.float32)
        p["bds"] = 0.1 * jax.random.normal(ks[7], (n_outputs,), jnp.float32)
    return p


# ----------------------------------------------------------------------------
# Pure-JAX reference (same semantics as the PyTorch forward, eval mode),
# mirroring the kernel's bf16 quantization points with f32 accumulation.
# ----------------------------------------------------------------------------
def tcn_block_reference(x, params, *, kernel_size, stride, dilation, padding):
    bf = lambda a: a.astype(jnp.bfloat16).astype(jnp.float32)

    def conv1d(inp, w, b, pad, dil):
        out = jax.lax.conv_general_dilated(
            inp, w, window_strides=(stride,), padding=[(pad, pad)],
            rhs_dilation=(dil,), dimension_numbers=("NCH", "OIH", "NCH"),
            precision=jax.lax.Precision.HIGHEST)
        return out + b[None, :, None]

    xq = bf(x)
    y = conv1d(xq, bf(params["w1"]), params["b1"], padding, dilation)
    y = y[:, :, :-padding] if padding > 0 else y              # Chomp1d
    y = jnp.maximum(y, 0.0)
    y = conv1d(bf(y), bf(params["w2"]), params["b2"], padding, dilation)
    y = y[:, :, :-padding] if padding > 0 else y              # Chomp1d
    y = jnp.maximum(y, 0.0)
    if "wds" in params:
        res = conv1d(xq, bf(params["wds"]), params["bds"], 0, 1)  # 1x1 downsample
    else:
        res = xq                                               # identity residual
    return jnp.maximum(y + res, 0.0)


if __name__ == "__main__":
    key = jax.random.PRNGKey(0)

    _single_buffer_supported()   # warm the probe eagerly (outside any jit trace)

    def run_case(Cin, Cout, N=2, L=16, K=3, dilation=2):
        padding = (K - 1) * dilation
        k_x, k_p = jax.random.split(jax.random.fold_in(key, Cin * 1000 + Cout))
        x = jax.random.normal(k_x, (N, Cin, L), jnp.float32)
        params = init_params(k_p, Cin, Cout, K)

        fwd = functools.partial(tcn_block_forward, kernel_size=K, stride=1,
                                dilation=dilation, padding=padding)
        out = jax.block_until_ready(jax.jit(fwd)(x, params))

        ref = tcn_block_reference(x, params, kernel_size=K, stride=1,
                                  dilation=dilation, padding=padding)
        # kernel output is stored in bf16 -> compare with bf16-level tolerance
        np.testing.assert_allclose(np.asarray(out), np.asarray(ref),
                                   rtol=2e-2, atol=2e-2)

    # batch=2, seq len 16, kernel_size=3, dilation=2, causal padding=(K-1)*d=4
    run_case(4, 8)   # Cin != Cout -> fused 1x1 downsample residual branch
    run_case(8, 8)   # Cin == Cout -> identity residual branch
    print("KERNEL_OK")
</pallas_src>

<mosaic_0001>
module attributes {stable_mosaic.version = 11 : i64} {
  func.func @kernel(%arg0: i32, %arg1: memref<16x128xbf16, #tpu.memory_space<vmem>>, %arg2: memref<128x512xbf16, #tpu.memory_space<vmem>>, %arg3: memref<1x128xf32, #tpu.memory_space<vmem>>, %arg4: memref<128x384xbf16, #tpu.memory_space<vmem>>, %arg5: memref<1x128xf32, #tpu.memory_space<vmem>>, %arg6: memref<1x128xf32, #tpu.memory_space<vmem>>, %arg7: memref<16x128xbf16, #tpu.memory_space<vmem>>) attributes {dimension_semantics = [#tpu.dimension_semantics<parallel>], iteration_bounds = array<i64: 2>, scalar_prefetch = 0 : i64, scratch_operands = 0 : i64, tpu.core_type = #tpu.core_type<tc>, window_params = [{transform_indices = @transform_0, window_bounds = array<i64: 16, 128>}, {pipeline_mode = #tpu.pipeline_mode<synchronous>, transform_indices = @transform_1, window_bounds = array<i64: 128, 512>}, {pipeline_mode = #tpu.pipeline_mode<synchronous>, transform_indices = @transform_2, window_bounds = array<i64: 1, 128>}, {pipeline_mode = #tpu.pipeline_mode<synchronous>, transform_indices = @transform_3, window_bounds = array<i64: 128, 384>}, {pipeline_mode = #tpu.pipeline_mode<synchronous>, transform_indices = @transform_4, window_bounds = array<i64: 1, 128>}, {pipeline_mode = #tpu.pipeline_mode<synchronous>, transform_indices = @transform_5, window_bounds = array<i64: 1, 128>}, {transform_indices = @transform_6, window_bounds = array<i64: 16, 128>}]} {
    %0 = tpu.iota {dimensions = array<i32: 1>} : vector<1x16x128xi32>
    %1 = vector.shape_cast %0 : vector<1x16x128xi32> to vector<16x128xi32>
    %c0 = arith.constant 0 : index
    %c0_0 = arith.constant 0 : index
    %2 = vector.load %arg1[%c0, %c0_0] : memref<16x128xbf16, #tpu.memory_space<vmem>>, vector<16x128xbf16>
    %c0_1 = arith.constant 0 : index
    %c0_2 = arith.constant 0 : index
    %3 = vector.load %arg2[%c0_1, %c0_2] : memref<128x512xbf16, #tpu.memory_space<vmem>>, vector<128x512xbf16>
    %cst = arith.constant dense<0.000000e+00> : vector<16x512xf32>
    %4 = tpu.matmul %2, %3, %cst {dimension_numbers = #tpu.dot_dimension_numbers<[1], [0], [0], [1], [0, 0, 1, 1], [], []>} : vector<16x128xbf16>, vector<128x512xbf16>, vector<16x512xf32> -> vector<16x512xf32>
    %5 = vector.extract_strided_slice %4 {offsets = [0, 256], sizes = [16, 128], strides = [1, 1]} : vector<16x512xf32> to vector<16x128xf32>
    %6 = vector.extract_strided_slice %4 {offsets = [0, 0], sizes = [16, 128], strides = [1, 1]} : vector<16x512xf32> to vector<16x128xf32>
    %c4_i32 = arith.constant 4 : i32
    %7 = tpu.dynamic_rotate %6 by %c4_i32 dim 0 : vector<16x128xf32>, i32 -> vector<16x128xf32>
    %c4_i32_3 = arith.constant 4 : i32
    %8 = vector.broadcast %c4_i32_3 : i32 to vector<16x128xi32>
    %9 = arith.cmpi sge, %1, %8 : vector<16x128xi32>
    %cst_4 = arith.constant 0.000000e+00 : f32
    %10 = vector.broadcast %cst_4 : f32 to vector<16x128xf32>
    %11 = arith.select %9, %7, %10 : vector<16x128xi1>, vector<16x128xf32>
    %12 = arith.addf %5, %11 : vector<16x128xf32>
    %13 = vector.extract_strided_slice %4 {offsets = [0, 128], sizes = [16, 128], strides = [1, 1]} : vector<16x512xf32> to vector<16x128xf32>
    %c2_i32 = arith.constant 2 : i32
    %14 = tpu.dynamic_rotate %13 by %c2_i32 dim 0 : vector<16x128xf32>, i32 -> vector<16x128xf32>
    %c2_i32_5 = arith.constant 2 : i32
    %15 = vector.broadcast %c2_i32_5 : i32 to vector<16x128xi32>
    %16 = arith.cmpi sge, %1, %15 : vector<16x128xi32>
    %cst_6 = arith.constant 0.000000e+00 : f32
    %17 = vector.broadcast %cst_6 : f32 to vector<16x128xf32>
    %18 = arith.select %16, %14, %17 : vector<16x128xi1>, vector<16x128xf32>
    %19 = arith.addf %12, %18 : vector<16x128xf32>
    %c0_7 = arith.constant 0 : index
    %c0_8 = arith.constant 0 : index
    %20 = vector.load %arg3[%c0_7, %c0_8] : memref<1x128xf32, #tpu.memory_space<vmem>>, vector<1x128xf32>
    %21 = vector.broadcast %20 : vector<1x128xf32> to vector<16x128xf32>
    %22 = arith.addf %19, %21 : vector<16x128xf32>
    %cst_9 = arith.constant 0.000000e+00 : f32
    %23 = vector.broadcast %cst_9 : f32 to vector<16x128xf32>
    %24 = arith.maximumf %22, %23 : vector<16x128xf32>
    %25 = arith.truncf %24 : vector<16x128xf32> to vector<16x128xbf16>
    %c0_10 = arith.constant 0 : index
    %c0_11 = arith.constant 0 : index
    %26 = vector.load %arg4[%c0_10, %c0_11] : memref<128x384xbf16, #tpu.memory_space<vmem>>, vector<128x384xbf16>
    %cst_12 = arith.constant dense<0.000000e+00> : vector<16x384xf32>
    %27 = tpu.matmul %25, %26, %cst_12 {dimension_numbers = #tpu.dot_dimension_numbers<[1], [0], [0], [1], [0, 0, 1, 1], [], []>} : vector<16x128xbf16>, vector<128x384xbf16>, vector<16x384xf32> -> vector<16x384xf32>
    %28 = vector.extract_strided_slice %27 {offsets = [0, 256], sizes = [16, 128], strides = [1, 1]} : vector<16x384xf32> to vector<16x128xf32>
    %29 = vector.extract_strided_slice %27 {offsets = [0, 0], sizes = [16, 128], strides = [1, 1]} : vector<16x384xf32> to vector<16x128xf32>
    %c4_i32_13 = arith.constant 4 : i32
    %30 = tpu.dynamic_rotate %29 by %c4_i32_13 dim 0 : vector<16x128xf32>, i32 -> vector<16x128xf32>
    %c4_i32_14 = arith.constant 4 : i32
    %31 = vector.broadcast %c4_i32_14 : i32 to vector<16x128xi32>
    %32 = arith.cmpi sge, %1, %31 : vector<16x128xi32>
    %cst_15 = arith.constant 0.000000e+00 : f32
    %33 = vector.broadcast %cst_15 : f32 to vector<16x128xf32>
    %34 = arith.select %32, %30, %33 : vector<16x128xi1>, vector<16x128xf32>
    %35 = arith.addf %28, %34 : vector<16x128xf32>
    %36 = vector.extract_strided_slice %27 {offsets = [0, 128], sizes = [16, 128], strides = [1, 1]} : vector<16x384xf32> to vector<16x128xf32>
    %c2_i32_16 = arith.constant 2 : i32
    %37 = tpu.dynamic_rotate %36 by %c2_i32_16 dim 0 : vector<16x128xf32>, i32 -> vector<16x128xf32>
    %c2_i32_17 = arith.constant 2 : i32
    %38 = vector.broadcast %c2_i32_17 : i32 to vector<16x128xi32>
    %39 = arith.cmpi sge, %1, %38 : vector<16x128xi32>
    %cst_18 = arith.constant 0.000000e+00 : f32
    %40 = vector.broadcast %cst_18 : f32 to vector<16x128xf32>
    %41 = arith.select %39, %37, %40 : vector<16x128xi1>, vector<16x128xf32>
    %42 = arith.addf %35, %41 : vector<16x128xf32>
    %c0_19 = arith.constant 0 : index
    %c0_20 = arith.constant 0 : index
    %43 = vector.load %arg5[%c0_19, %c0_20] : memref<1x128xf32, #tpu.memory_space<vmem>>, vector<1x128xf32>
    %44 = vector.broadcast %43 : vector<1x128xf32> to vector<16x128xf32>
    %45 = arith.addf %42, %44 : vector<16x128xf32>
    %cst_21 = arith.constant 0.000000e+00 : f32
    %46 = vector.broadcast %cst_21 : f32 to vector<16x128xf32>
    %47 = arith.maximumf %45, %46 : vector<16x128xf32>
    %48 = vector.extract_strided_slice %4 {offsets = [0, 384], sizes = [16, 128], strides = [1, 1]} : vector<16x512xf32> to vector<16x128xf32>
    %c0_22 = arith.constant 0 : index
    %c0_23 = arith.constant 0 : index
    %49 = vector.load %arg6[%c0_22, %c0_23] : memref<1x128xf32, #tpu.memory_space<vmem>>, vector<1x128xf32>
    %50 = vector.broadcast %49 : vector<1x128xf32> to vector<16x128xf32>
    %51 = arith.addf %48, %50 : vector<16x128xf32>
    %52 = arith.addf %47, %51 : vector<16x128xf32>
    %cst_24 = arith.constant 0.000000e+00 : f32
    %53 = vector.broadcast %cst_24 : f32 to vector<16x128xf32>
    %54 = arith.maximumf %52, %53 : vector<16x128xf32>
    %55 = arith.truncf %54 : vector<16x128xf32> to vector<16x128xbf16>
    %c0_25 = arith.constant 0 : index
    %c0_26 = arith.constant 0 : index
    %56 = vector.load %arg7[%c0_25, %c0_26] : memref<16x128xbf16, #tpu.memory_space<vmem>>, vector<16x128xbf16>
    tpu.vector_store %arg7[%c0_25, %c0_26], %55 {strides = array<i32>} : memref<16x128xbf16, #tpu.memory_space<vmem>>, vector<16x128xbf16>,
    return
  }
  func.func @transform_0(%arg0: i32) -> (i32, i32) {
    %c0_i32 = arith.constant 0 : i32
    %c0_i32_0 = arith.constant 0 : i32
    return %arg0, %c0_i32 : i32, i32
  }
  func.func @transform_1(%arg0: i32) -> (i32, i32) {
    %c0_i32 = arith.constant 0 : i32
    %c0_i32_0 = arith.constant 0 : i32
    %c0_i32_1 = arith.constant 0 : i32
    return %c0_i32, %c0_i32_0 : i32, i32
  }
  func.func @transform_2(%arg0: i32) -> (i32, i32) {
    %c0_i32 = arith.constant 0 : i32
    %c0_i32_0 = arith.constant 0 : i32
    %c0_i32_1 = arith.constant 0 : i32
    return %c0_i32, %c0_i32_0 : i32, i32
  }
  func.func @transform_3(%arg0: i32) -> (i32, i32) {
    %c0_i32 = arith.constant 0 : i32
    %c0_i32_0 = arith.constant 0 : i32
    %c0_i32_1 = arith.constant 0 : i32
    return %c0_i32, %c0_i32_0 : i32, i32
  }
  func.func @transform_4(%arg0: i32) -> (i32, i32) {
    %c0_i32 = arith.constant 0 : i32
    %c0_i32_0 = arith.constant 0 : i32
    %c0_i32_1 = arith.constant 0 : i32
    return %c0_i32, %c0_i32_0 : i32, i32
  }
  func.func @transform_5(%arg0: i32) -> (i32, i32) {
    %c0_i32 = arith.constant 0 : i32
    %c0_i32_0 = arith.constant 0 : i32
    %c0_i32_1 = arith.constant 0 : i32
    return %c0_i32, %c0_i32_0 : i32, i32
  }
  func.func @transform_6(%arg0: i32) -> (i32, i32) {
    %c0_i32 = arith.constant 0 : i32
    %c0_i32_0 = arith.constant 0 : i32
    return %arg0, %c0_i32 : i32, i32
  }
}

</mosaic_0001>

<bundles_post_ra>
// kernel: tcn_block_forward.1
= control target key start
LH: loop header
LB: loop body
LE: loop exit
PB: predicated region body
PF: predicated region fallthrough
CT: control target
= control target key end

     0   :  { %s1196_s21 = smov 0   ;;  %s1585_s0 = inlined_call_operand.vmem [shape: bf16[32,128], index: 0, kind: input, shape index: {}]   ;;  %s1586_s1 = inlined_call_operand.vmem [shape: bf16[128,512], index: 1, kind: input, shape index: {}]   ;;  %s1587_s2 = inlined_call_operand.vmem [shape: f32[1,128], index: 2, kind: input, shape index: {}]   ;;  %s1588_s3 = inlined_call_operand.vmem [shape: bf16[128,384], index: 3, kind: input, shape index: {}]   ;;  %s1589_s4 = inlined_call_operand.vmem [shape: f32[1,128], index: 4, kind: input, shape index: {}]   ;;  %s1590_s5 = inlined_call_operand.vmem [shape: f32[1,128], index: 5, kind: input, shape index: {}]   ;;  %s1591_s6 = inlined_call_operand.vmem [shape: bf16[32,128], index: 6, kind: output, shape index: {}]  }
   0x1 LB: > { %s841_s22 = sadd.s32 4294967295, %s1159_s21   ;;  %p845_p0 = scmp.ge.s32.totalorder %s1159_s21, 1  ;;  %s1159_s21 = sphi %s1196_s21, %s16_s21  }
   0x2   : > { %p213_p1 = scmp.lt.s32.totalorder %s1159_s21, 3 }
   0x4   : > { %p214_p2 = pnand %p845_p0, %p213_p1 }
   0x5   : > { %s846_s25 = sshll.u32 (!%p214_p2), %s841_s22, 1 }
   0x6   : > { %217 = sbr.rel (%p214_p2) target bundleno = 354 (0x162), region = 44  ;;  %p244_p3 = scmp.lt.s32.totalorder (!%p214_p2), %s846_s25, 3 }
   0xb   : > { %v968_v0 = vld [vmem:[%s1586_s1 + $0xe0] sm:$0xf]  ;;  %v1111_v1 = vld [vmem:[%s1586_s1 + $0xec] sm:$0xf0]  ;;  %v1109_v2 = vld [vmem:[%s1586_s1 + $0xe4] sm:$0xf] }
   0xc   : > { %v969_v3 = vor.u32 %v1111_v1, %v968_v0  ;;  %v970_v4 = vld [vmem:[%s1586_s1 + $0xf0] sm:$0xf0]  ;;  %v976_v5 = vld [vmem:[%s1586_s1 + $0xe8] sm:$0xf]  ;;  %v1112_v6 = vld [vmem:[%s1586_s1 + $0xf4] sm:$0xf0] }
   0xd   : > { %v973_v7 = vor.u32 %v1109_v2, %v970_v4  ;;  %v977_v8 = vor.u32 %v1112_v6, %v976_v5  ;;  %v952_v9 = vld [vmem:[%s1586_s1 + $0xc0] sm:$0xf]  ;;  %v1107_v10 = vld [vmem:[%s1586_s1 + $0xcc] sm:$0xf0]  ;;  %v1105_v11 = vld [vmem:[%s1586_s1 + $0xc4] sm:$0xf] }
   0xe   : > { %458 = vmatpush.bf16.msra.mxu0 %v969_v3  ;;  %v953_v12 = vor.u32 %v1107_v10, %v952_v9  ;;  %v954_v13 = vld [vmem:[%s1586_s1 + $0xd0] sm:$0xf0]  ;;  %v960_v14 = vld [vmem:[%s1586_s1 + $0xc8] sm:$0xf]  ;;  %v1108_v15 = vld [vmem:[%s1586_s1 + $0xd4] sm:$0xf0] }
   0xf   : > { %472 = vmatpush.bf16.msra.mxu1 %v973_v7  ;;  %486 = vmatpush.bf16.msra.mxu2 %v977_v8  ;;  %v957_v16 = vor.u32 %v1105_v11, %v954_v13  ;;  %v961_v17 = vor.u32 %v1108_v15, %v960_v14  ;;  %v936_v18 = vld [vmem:[%s1586_s1 + $0xa0] sm:$0xf]  ;;  %v1103_v19 = vld [vmem:[%s1586_s1 + $0xac] sm:$0xf0]  ;;  %v1101_v20 = vld [vmem:[%s1586_s1 + $0xa4] sm:$0xf] }
  0x10   : > { %v938_v21 = vld [vmem:[%s1586_s1 + $0xb0] sm:$0xf0]  ;;  %v944_v22 = vld [vmem:[%s1586_s1 + $0xa8] sm:$0xf]  ;;  %v1104_v23 = vld [vmem:[%s1586_s1 + $0xb4] sm:$0xf0]  ;;  %v937_v24 = vor.u32 %v1103_v19, %v936_v18 }
  0x11   : > { %v941_v25 = vor.u32 %v1101_v20, %v938_v21  ;;  %v945_v26 = vor.u32 %v1104_v23, %v944_v22  ;;  %v920_v27 = vld [vmem:[%s1586_s1 + $0x80] sm:$0xf]  ;;  %v1099_v28 = vld [vmem:[%s1586_s1 + $0x8c] sm:$0xf0]  ;;  %v1097_v29 = vld [vmem:[%s1586_s1 + $0x84] sm:$0xf] }
  0x12   : > { %459 = vmatpush.bf16.msra.mxu0 %v953_v12  ;;  %v922_v30 = vld [vmem:[%s1586_s1 + $0x90] sm:$0xf0]  ;;  %v928_v31 = vld [vmem:[%s1586_s1 + $0x88] sm:$0xf]  ;;  %v1100_v32 = vld [vmem:[%s1586_s1 + $0x94] sm:$0xf0]  ;;  %v921_v33 = vor.u32 %v1099_v28, %v920_v27 }
  0x13   : > { %473 = vmatpush.bf16.msra.mxu1 %v957_v16  ;;  %487 = vmatpush.bf16.msra.mxu2 %v961_v17  ;;  %v925_v34 = vor.u32 %v1097_v29, %v922_v30  ;;  %v929_v35 = vor.u32 %v1100_v32, %v928_v31  ;;  %v904_v36 = vld [vmem:[%s1586_s1 + $0x60] sm:$0xf]  ;;  %v1095_v37 = vld [vmem:[%s1586_s1 + $0x6c] sm:$0xf0]  ;;  %v1093_v38 = vld [vmem:[%s1586_s1 + $0x64] sm:$0xf] }
  0x14   : > { %v906_v39 = vld [vmem:[%s1586_s1 + $0x70] sm:$0xf0]  ;;  %v912_v40 = vld [vmem:[%s1586_s1 + $0x68] sm:$0xf]  ;;  %v1096_v41 = vld [vmem:[%s1586_s1 + $0x74] sm:$0xf0]  ;;  %v905_v43 = vor.u32 %v1095_v37, %v904_v36 }
  0x15   : > { %v888_v42 = vld [vmem:[%s1586_s1 + $0x40] sm:$0xf]  ;;  %v1091_v44 = vld [vmem:[%s1586_s1 + $0x4c] sm:$0xf0]  ;;  %v1089_v45 = vld [vmem:[%s1586_s1 + $0x44] sm:$0xf]  ;;  %v909_v47 = vor.u32 %v1093_v38, %v906_v39  ;;  %v913_v48 = vor.u32 %v1096_v41, %v912_v40 }
  0x16   : > { %460 = vmatpush.bf16.msra.mxu0 %v937_v24  ;;  %v890_v46 = vld [vmem:[%s1586_s1 + $0x50] sm:$0xf0]  ;;  %v1110_v49 = vld [vmem:[%s1586_s1 + $0xec] sm:$0xf]  ;;  %v978_v50 = vld [vmem:[%s1586_s1 + $0xf8] sm:$0xf0]  ;;  %v889_v54 = vor.u32 %v1091_v44, %v888_v42 }
  0x17   : > { %474 = vmatpush.bf16.msra.mxu1 %v941_v25  ;;  %488 = vmatpush.bf16.msra.mxu2 %v945_v26  ;;  %v896_v51 = vld [vmem:[%s1586_s1 + $0x48] sm:$0xf]  ;;  %v1092_v52 = vld [vmem:[%s1586_s1 + $0x54] sm:$0xf0]  ;;  %v981_v53 = vor.u32 %v1110_v49, %v978_v50  ;;  %v872_v55 = vld [vmem:[%s1586_s1 + $0x20] sm:$0xf]  ;;  %v893_v58 = vor.u32 %v1089_v45, %v890_v46 }
  0x18   : > { %v1087_v56 = vld [vmem:[%s1586_s1 + $0x2c] sm:$0xf0]  ;;  %v1106_v57 = vld [vmem:[%s1586_s1 + $0xcc] sm:$0xf]  ;;  %v897_v59 = vor.u32 %v1092_v52, %v896_v51  ;;  %v1085_v60 = vld [vmem:[%s1586_s1 + $0x24] sm:$0xf] }
  0x19   : > { %500 = vmatpush.bf16.msra.mxu3 %v981_v53  ;;  %s1593_s25 = smov (!%p244_p3, %s846_s25), 3  ;;  %v962_v61 = vld [vmem:[%s1586_s1 + $0xd8] sm:$0xf0]  ;;  %v874_v62 = vld [vmem:[%s1586_s1 + $0x30] sm:$0xf0]  ;;  %v873_v3 = vor.u32 %v1087_v56, %v872_v55 }
  0x1a   : > { %461 = vmatpush.bf16.msra.mxu0 %v921_v33  ;;  %v880_v63 = vld [vmem:[%s1586_s1 + $0x28] sm:$0xf]  ;;  %v1088_v0 = vld [vmem:[%s1586_s1 + $0x34] sm:$0xf0]  ;;  %v965_v1 = vor.u32 %v1106_v57, %v962_v61  ;;  %v856_v2 = vld [vmem:[%s1586_s1] sm:$0xf]  ;;  %v877_v5 = vor.u32 %v1085_v60, %v874_v62 }
  0x1b   : > { %475 = vmatpush.bf16.msra.mxu1 %v925_v34  ;;  %489 = vmatpush.bf16.msra.mxu2 %v929_v35  ;;  %v1083_v4 = vld [vmem:[%s1586_s1 + $0xc] sm:$0xf0]  ;;  %v881_v6 = vor.u32 %v1088_v0, %v880_v63  ;;  %v1081_v7 = vld [vmem:[%s1586_s1 + $0x4] sm:$0xf]  ;;  %v858_v8 = vld [vmem:[%s1586_s1 + $0x10] sm:$0xf0] }
  0x1c   : > { %s847_s11 = sshll.u32 %s1593_s25, 2  ;;  %v864_v9 = vld [vmem:[%s1586_s1 + $0x8] sm:$0xf]  ;;  %v1084_v10 = vld [vmem:[%s1586_s1 + $0x14] sm:$0xf0]  ;;  %v857_v15 = vor.u32 %v1083_v4, %v856_v2  ;;  %v861_v18 = vor.u32 %v1081_v7, %v858_v8 }
  0x1d   : > { %501 = vmatpush.bf16.msra.mxu3 %v965_v1  ;;  %v1068_v11 = vld [vmem:[%s1588_s3 + $0xa8] sm:$0xf]  ;;  %v1135_v12 = vld [vmem:[%s1588_s3 + $0xb0] sm:$0xf0]  ;;  %v1134_v13 = vld [vmem:[%s1588_s3 + $0xac] sm:$0xf]  ;;  %s247_s29 = scalar_lea.vmem %s1585_s0, %s847_s11  ;;  %v865_v19 = vor.u32 %v1084_v10, %v864_v9  ;;  %s253_s23 = scalar_lea.vmem %s1591_s6, %s847_s11 }
  0x1e   : > { %462 = vmatpush.bf16.msra.mxu0 %v905_v43  ;;  %v1070_v14 = vld [vmem:[%s1588_s3 + $0xb4] sm:$0xf0]  ;;  %v1076_v16 = vld [vmem:[%s1588_s3 + $0xb0] sm:$0xf]  ;;  %v1136_v17 = vld [vmem:[%s1588_s3 + $0xb8] sm:$0xf0]  ;;  %v1069_v20 = vor.u32 %v1135_v12, %v1068_v11 }
  0x1f   : > { %476 = vmatpush.bf16.msra.mxu1 %v909_v47  ;;  %490 = vmatpush.bf16.msra.mxu2 %v913_v48  ;;  %v1073_v21 = vor.u32 %v1134_v13, %v1070_v14  ;;  %v1056_v22 = vld [vmem:[%s1588_s3 + $0x90] sm:$0xf]  ;;  %v1132_v23 = vld [vmem:[%s1588_s3 + $0x98] sm:$0xf0]  ;;  %v1394_v24 = vld [vmem:[%s247_s29] sm:$0xff]  ;;  %v1077_v25 = vor.u32 %v1136_v17, %v1076_v16 }
  0x20   : > { %v1131_v26 = vld [vmem:[%s1588_s3 + $0x94] sm:$0xf]  ;;  %v1058_v27 = vld [vmem:[%s1588_s3 + $0x9c] sm:$0xf0]  ;;  %v1064_v28 = vld [vmem:[%s1588_s3 + $0x98] sm:$0xf]  ;;  %v1057_v30 = vor.u32 %v1132_v23, %v1056_v22 }
  0x21   : > { %v1133_v29 = vld [vmem:[%s1588_s3 + $0xa0] sm:$0xf0]  ;;  %v1061_v31 = vor.u32 %v1131_v26, %v1058_v27  ;;  %v1102_v33 = vld [vmem:[%s1586_s1 + $0xac] sm:$0xf]  ;;  %v946_v34 = vld [vmem:[%s1586_s1 + $0xb8] sm:$0xf0] }
  0x22   : > { %463 = vmatpush.bf16.msra.mxu0 %v889_v54  ;;  %v1065_v32 = vor.u32 %v1133_v29, %v1064_v28  ;;  %v949_v35 = vor.u32 %v1102_v33, %v946_v34  ;;  %v1044_v36 = vld [vmem:[%s1588_s3 + $0x78] sm:$0xf]  ;;  %v1129_v37 = vld [vmem:[%s1588_s3 + $0x80] sm:$0xf0]  ;;  %v1128_v38 = vld [vmem:[%s1588_s3 + $0x7c] sm:$0xf] }
  0x23   : > { %477 = vmatpush.bf16.msra.mxu1 %v893_v58  ;;  %491 = vmatpush.bf16.msra.mxu2 %v897_v59  ;;  %v1045_v39 = vor.u32 %v1129_v37, %v1044_v36  ;;  %v1046_v40 = vld [vmem:[%s1588_s3 + $0x84] sm:$0xf0]  ;;  %v1052_v41 = vld [vmem:[%s1588_s3 + $0x80] sm:$0xf]  ;;  %v1130_v42 = vld [vmem:[%s1588_s3 + $0x88] sm:$0xf0] }
  0x24   : > { %502 = vmatpush.bf16.msra.mxu3 %v949_v35  ;;  %v1049_v43 = vor.u32 %v1128_v38, %v1046_v40  ;;  %v1053_v44 = vor.u32 %v1130_v42, %v1052_v41  ;;  %v1098_v45 = vld [vmem:[%s1586_s1 + $0x8c] sm:$0xf]  ;;  %v930_v46 = vld [vmem:[%s1586_s1 + $0x98] sm:$0xf0]  ;;  %v1032_v48 = vld [vmem:[%s1588_s3 + $0x60] sm:$0xf] }
  0x25   : > { %v933_v47 = vor.u32 %v1098_v45, %v930_v46  ;;  %v1126_v49 = vld [vmem:[%s1588_s3 + $0x68] sm:$0xf0]  ;;  %v1125_v50 = vld [vmem:[%s1588_s3 + $0x64] sm:$0xf]  ;;  %v1034_v52 = vld [vmem:[%s1588_s3 + $0x6c] sm:$0xf0] }
  0x26   : > { %464 = vmatpush.bf16.msra.mxu0 %v873_v3  ;;  %v1033_v51 = vor.u32 %v1126_v49, %v1032_v48  ;;  %v1040_v53 = vld [vmem:[%s1588_s3 + $0x68] sm:$0xf]  ;;  %v1127_v54 = vld [vmem:[%s1588_s3 + $0x70] sm:$0xf0]  ;;  %v1037_v55 = vor.u32 %v1125_v50, %v1034_v52  ;;  %v1094_v57 = vld [vmem:[%s1586_s1 + $0x6c] sm:$0xf] }
  0x27   : > { %478 = vmatpush.bf16.msra.mxu1 %v877_v5  ;;  %492 = vmatpush.bf16.msra.mxu2 %v881_v6  ;;  %v1041_v56 = vor.u32 %v1127_v54, %v1040_v53  ;;  %v914_v58 = vld [vmem:[%s1586_s1 + $0x78] sm:$0xf0]  ;;  %v1020_v60 = vld [vmem:[%s1588_s3 + $0x48] sm:$0xf]  ;;  %v1123_v61 = vld [vmem:[%s1588_s3 + $0x50] sm:$0xf0] }
  0x28   : > { %503 = vmatpush.bf16.msra.mxu3 %v933_v47  ;;  %v917_v59 = vor.u32 %v1094_v57, %v914_v58  ;;  %v1122_v62 = vld [vmem:[%s1588_s3 + $0x4c] sm:$0xf]  ;;  %v1021_v63 = vor.u32 %v1123_v61, %v1020_v60  ;;  %v1022_v0 = vld [vmem:[%s1588_s3 + $0x54] sm:$0xf0]  ;;  %v1028_v1 = vld [vmem:[%s1588_s3 + $0x50] sm:$0xf] }
  0x29   : > { %v1025_v2 = vor.u32 %v1122_v62, %v1022_v0  ;;  %v1124_v3 = vld [vmem:[%s1588_s3 + $0x58] sm:$0xf0]  ;;  %v1090_v4 = vld [vmem:[%s1586_s1 + $0x4c] sm:$0xf]  ;;  %v1008_v8 = vld [vmem:[%s1588_s3 + $0x30] sm:$0xf] }
  0x2a   : > { %465 = vmatpush.bf16.msra.mxu0 %v857_v15  ;;  %v898_v5 = vld [vmem:[%s1586_s1 + $0x58] sm:$0xf0]  ;;  %v1029_v6 = vor.u32 %v1124_v3, %v1028_v1  ;;  %v1119_v11 = vld [vmem:[%s1588_s3 + $0x34] sm:$0xf]  ;;  %v1010_v12 = vld [vmem:[%s1588_s3 + $0x3c] sm:$0xf0] }
  0x2b   : > { %479 = vmatpush.bf16.msra.mxu1 %v861_v18  ;;  %493 = vmatpush.bf16.msra.mxu2 %v865_v19  ;;  %v901_v7 = vor.u32 %v1090_v4, %v898_v5  ;;  %v1120_v9 = vld [vmem:[%s1588_s3 + $0x38] sm:$0xf0]  ;;  %v1016_v13 = vld [vmem:[%s1588_s3 + $0x38] sm:$0xf]  ;;  %v1013_v14 = vor.u32 %v1119_v11, %v1010_v12  ;;  %v1121_v15 = vld [vmem:[%s1588_s3 + $0x40] sm:$0xf0] }
  0x2c   : > { %504 = vmatpush.bf16.msra.mxu3 %v917_v59  ;;  %v1009_v10 = vor.u32 %v1120_v9, %v1008_v8  ;;  %v1086_v16 = vld [vmem:[%s1586_s1 + $0x2c] sm:$0xf]  ;;  %v882_v17 = vld [vmem:[%s1586_s1 + $0x38] sm:$0xf0]  ;;  %v1017_v18 = vor.u32 %v1121_v15, %v1016_v13  ;;  %v1004_v26 = vld [vmem:[%s1588_s3 + $0x20] sm:$0xf] }
  0x2d   : > { %466 = vmatmul.bf16.vlgmr.msra.gmra.mxu0 %v1394_v24  ;;  %v885_v19 = vor.u32 %v1086_v16, %v882_v17  ;;  %v1116_v23 = vld [vmem:[%s1588_s3 + $0x1c] sm:$0xf]  ;;  %v1118_v28 = vld [vmem:[%s1588_s3 + $0x28] sm:$0xf0]  ;;  %v984_v33 = vld [vmem:[%s1588_s3] sm:$0xf] }
  0x2e   : > { %705 = vmatpush.bf16.msrb.mxu0 %v1069_v20  ;;  %480 = vmatmul.bf16.vlgmr.msra.gmra.mxu1 %v1394_v24  ;;  %v996_v20 = vld [vmem:[%s1588_s3 + $0x18] sm:$0xf]  ;;  %v1082_v29 = vld [vmem:[%s1586_s1 + $0xc] sm:$0xf]  ;;  %v1113_v35 = vld [vmem:[%s1588_s3 + $0x4] sm:$0xf] }
  0x2f   : > { %719 = vmatpush.bf16.msrb.mxu1 %v1073_v21  ;;  %733 = vmatpush.bf16.msrb.mxu2 %v1077_v25  ;;  %v1117_v21 = vld [vmem:[%s1588_s3 + $0x20] sm:$0xf0]  ;;  %v998_v25 = vld [vmem:[%s1588_s3 + $0x24] sm:$0xf0]  ;;  %v1114_v34 = vld [vmem:[%s1588_s3 + $0x8] sm:$0xf0] }
  0x30   : > { %494 = vmatmul.bf16.vlgmr.msra.gmra.mxu2 %v1394_v24  ;;  %505 = vmatpush.bf16.msra.mxu3 %v901_v7  ;;  %v997_v22 = vor.u32 %v1117_v21, %v996_v20  ;;  %v1001_v27 = vor.u32 %v1116_v23, %v998_v25  ;;  %v985_v36 = vor.u32 %v1114_v34, %v984_v33  ;;  %v986_v37 = vld [vmem:[%s1588_s3 + $0xc] sm:$0xf0]  ;;  %v992_v38 = vld [vmem:[%s1588_s3 + $0x8] sm:$0xf]  ;;  %v1150_v57 = vld [vmem:[%s1587_s2] ss:$0 sm:$0xff] }
  0x31   : > { %v989_v40 = vor.u32 %v1113_v35, %v986_v37  ;;  %v1151_v25 = vld [vmem:[%s1590_s5] ss:$0 sm:$0xff] }
  0x32   : > { %706 = vmatpush.bf16.msrb.mxu0 %v1057_v30  ;;  %v866_v30 = vld [vmem:[%s1586_s1 + $0x18] sm:$0xf0] }
  0x33   : > { %720 = vmatpush.bf16.msrb.mxu1 %v1061_v31  ;;  %734 = vmatpush.bf16.msrb.mxu2 %v1065_v32  ;;  %v1005_v31 = vor.u32 %v1118_v28, %v1004_v26  ;;  %v869_v32 = vor.u32 %v1082_v29, %v866_v30 }
  0x34   : > { %506 = vmatpush.bf16.msra.mxu3 %v885_v19  ;;  %v1152_v19 = vld [vmem:[%s1589_s4] ss:$0 sm:$0xff] }
  0x36   : > { %707 = vmatpush.bf16.msrb.mxu0 %v1045_v39  ;;  %v1115_v39 = vld [vmem:[%s1588_s3 + $0x10] sm:$0xf0] }
  0x37   : > { %721 = vmatpush.bf16.msrb.mxu1 %v1049_v43  ;;  %735 = vmatpush.bf16.msrb.mxu2 %v1053_v44  ;;  %v993_v41 = vor.u32 %v1115_v39, %v992_v38  ;;  %v255_v43 = vlaneseq }
  0x38   : > { %507 = vmatpush.bf16.msra.mxu3 %v869_v32 }
  0x39   : > { %v256_v45 = vshrl.u32 %v255_v43, 7 }
  0x3a   : > { %708 = vmatpush.bf16.msrb.mxu0 %v1033_v51 }
  0x3b   : > { %722 = vmatpush.bf16.msrb.mxu1 %v1037_v55  ;;  %736 = vmatpush.bf16.msrb.mxu2 %v1041_v56  ;;  %vm516_vm0 = vcmp.lt.s32.totalorder %v256_v45, 4  ;;  %vm519_vm1 = vcmp.ge.s32.totalorder %v256_v45, 4  ;;  %vm527_vm2 = vcmp.lt.s32.totalorder %v256_v45, 2  ;;  %vm530_vm3 = vcmp.ge.s32.totalorder %v256_v45, 2 }
  0x3c   : > { %508 = vmatmul.bf16.vlgmr.msra.gmra.mxu3 %v1394_v24 }
  0x3e   : > { %709 = vmatpush.bf16.msrb.mxu0 %v1021_v63 }
  0x3f   : > { %723 = vmatpush.bf16.msrb.mxu1 %v1025_v2  ;;  %737 = vmatpush.bf16.msrb.mxu2 %v1029_v6 }
  0x42   : > { %710 = vmatpush.bf16.msrb.mxu0 %v1009_v10 }
  0x43   : > { %724 = vmatpush.bf16.msrb.mxu1 %v1013_v14  ;;  %738 = vmatpush.bf16.msrb.mxu2 %v1017_v18 }
  0x46   : > { %711 = vmatpush.bf16.msrb.mxu0 %v997_v22 }
  0x47   : > { %725 = vmatpush.bf16.msrb.mxu1 %v1001_v27  ;;  %739 = vmatpush.bf16.msrb.mxu2 %v1005_v31 }
  0x4a   : > { %712 = vmatpush.bf16.msrb.mxu0 %v985_v36 }
  0x4b   : > { %726 = vmatpush.bf16.msrb.mxu1 %v989_v40  ;;  %740 = vmatpush.bf16.msrb.mxu2 %v993_v41 }
  0xaa   : > { %v467_v42 = vpop.f32.mrf.mxu0 }
  0xab   : > { %v481_v44 = vpop.f32.mrf.mxu1  ;;  %v514_v48 = vrot.slane %v467_v42, 4 }
  0xac   : > { %v525_v51 = vrot.slane %v481_v44, 6 }
  0xb2   : > { %v469_v47 = vpop.f32.mrf.mxu0 }
  0xb3   : > { %v495_v46 = vpop.f32.mrf.mxu2  ;;  %v515_v49 = vrot.slane %v469_v47, 4  ;;  %v483_v50 = vpop.f32.mrf.mxu1 }
  0xb4   : > { %v526_v52 = vrot.slane %v483_v50, 6 }
  0xb5   : > { %v518_v53 = vsel %vm516_vm0, %v515_v49, %v514_v48  ;;  %v517_v60 = vsel %vm516_vm0, %v514_v48, %v515_v49 }
  0xb6   : > { %v521_v54 = vsel %vm519_vm1, %v518_v53, 0.0  ;;  %v529_v24 = vsel %vm527_vm2, %v526_v52, %v525_v51  ;;  %v528_v62 = vsel %vm527_vm2, %v525_v51, %v526_v52 }
  0xb7   : > { %v523_v55 = vadd.f32 %v521_v54, %v495_v46  ;;  %v532_v56 = vsel %vm530_vm3, %v529_v24, 0.0 }
  0xb9   : > { %v534_v58 = vadd.f32 %v532_v56, %v523_v55 }
  0xbb   : > { %v497_v59 = vpop.f32.mrf.mxu2  ;;  %v540_v0 = vadd.f32 %v1150_v57, %v534_v58 }
  0xbc   : > { %v524_v61 = vadd.f32 %v517_v60, %v497_v59 }
  0xbd   : > { %v542_v3 = vmax.f32 %v540_v0, 0.0 }
  0xbe   : > { %v535_v63 = vadd.f32 %v528_v62, %v524_v61 }
  0xbf   : > { %v509_v12 = vpop.f32.mrf.mxu3 }
  0xc0   : > { %v541_v1 = vadd.f32 %v1150_v57, %v535_v63  ;;  %v775_v32 = vadd.f32 %v1151_v25, %v509_v12 }
  0xc2   : > { %v543_v2 = vmax.f32 %v541_v1, 0.0 }
  0xc4   : > { %v544_v4 = vpack.c.bf16 %v543_v2, %v542_v3 }
  0xc6   : > { %713 = vmatmul.bf16.vlgmr.msrb.gmra.mxu0 %v544_v4  ;;  %727 = vmatmul.bf16.vlgmr.msrb.gmra.mxu1 %v544_v4 }
  0xc7   : > { %741 = vmatmul.bf16.vlgmr.msrb.gmra.mxu2 %v544_v4  ;;  %v511_v30 = vpop.f32.mrf.mxu3 }
  0xc8   : > { %v776_v34 = vadd.f32 %v1151_v25, %v511_v30 }
 0x143   : > { %v714_v5 = vpop.f32.mrf.mxu0  ;;  %v728_v6 = vpop.f32.mrf.mxu1 }
 0x144   : > { %v747_v10 = vrot.slane %v714_v5, 4  ;;  %v755_v11 = vrot.slane %v728_v6, 6 }
 0x14a   : > { %v742_v7 = vpop.f32.mrf.mxu2 }
 0x14b   : > { %v716_v8 = vpop.f32.mrf.mxu0  ;;  %v730_v9 = vpop.f32.mrf.mxu1 }
 0x14c   : > { %v748_v13 = vrot.slane %v716_v8, 4  ;;  %v756_v14 = vrot.slane %v730_v9, 6 }
 0x14e   : > { %v750_v15 = vsel %vm516_vm0, %v748_v13, %v747_v10  ;;  %v758_v16 = vsel %vm527_vm2, %v756_v14, %v755_v11  ;;  %v749_v23 = vsel %vm516_vm0, %v747_v10, %v748_v13  ;;  %v757_v27 = vsel %vm527_vm2, %v755_v11, %v756_v14 }
 0x14f   : > { %v751_v17 = vsel %vm519_vm1, %v750_v15, 0.0  ;;  %v759_v20 = vsel %vm530_vm3, %v758_v16, 0.0 }
 0x150   : > { %v753_v18 = vadd.f32 %v751_v17, %v742_v7 }
 0x152   : > { %v761_v21 = vadd.f32 %v759_v20, %v753_v18  ;;  %v744_v22 = vpop.f32.mrf.mxu2 }
 0x153   : > { %v754_v26 = vadd.f32 %v749_v23, %v744_v22 }
 0x154   : > { %v767_v28 = vadd.f32 %v1152_v19, %v761_v21 }
 0x155   : > { %v762_v29 = vadd.f32 %v757_v27, %v754_v26 }
 0x156   : > { %v769_v31 = vmax.f32 %v767_v28, 0.0 }
 0x157   : > { %v768_v33 = vadd.f32 %v1152_v19, %v762_v29 }
 0x158   : > { %v777_v36 = vadd.f32 %v775_v32, %v769_v31 }
 0x159   : > { %v770_v35 = vmax.f32 %v768_v33, 0.0 }
 0x15a   : > { %v779_v38 = vmax.f32 %v777_v36, 0.0 }
 0x15b   : > { %v778_v37 = vadd.f32 %v776_v34, %v770_v35 }
 0x15d   : > { %v780_v39 = vmax.f32 %v778_v37, 0.0 }
 0x15f   : > { %v1140_v40 = vpack.c.bf16 %v780_v39, %v779_v38 }
 0x161   : > { %1141 = vst [vmem:[%s253_s23] sm:$0xff] %v1140_v40  }
 0x162 PF: > { %s16_s21 = sadd.s32 1, %s1159_s21  }
 0x163   : > { %p13_p4 = scmp.ge.s32.totalorder %s16_s21, 4  }
 0x165   :  { %15 = sbr.rel (!%p13_p4) target bundleno = 1 (0x1), region = 74 }

</bundles_post_ra>
